<compile_context>
chip_gen: v5e
topology: v5e:2x2
jax: 0.10.0
libtpu: 0.0.40
codegen_flags: <defaults>
</compile_context>

<pallas_src>
import functools

import numpy as np
import jax
import jax.numpy as jnp
from jax import lax
from jax.experimental import pallas as pl
from jax.experimental.pallas import tpu as pltpu


# ----------------------------- Pallas kernels ---------------------------------
def spline_conv_elu_kernel(x_ref, xs_ref, bw_ref, dl_ref, w_ref, root_ref, bias_ref,
                           act_ref, psum_ref, psq_ref,
                           *, cin, cout, k_pad, tn, e_tile, n_true):
    """One destination-node tile: spline messages from the pre-gathered edge
    stream, segment-mean aggregation onto the tile, root transform + bias, ELU,
    and per-tile BatchNorm partial statistics."""
    t = pl.program_id(0)

    # ---- spline message: single MXU contraction over the cin*k_pad axis ----
    xs = xs_ref[...]                                    # (E_T, Cin)   f32, pre-gathered x[src]
    bwf = bw_ref[...].astype(jnp.float32)               # (E_T, K_pad) basis * 1/deg(dst)
    # prod[:, i*K_pad:(i+1)*K_pad] = xs[:, i:i+1] * bw   (lane-aligned concat, f32 weighting)
    prod = jnp.concatenate([xs[:, i:i + 1] * bwf for i in range(cin)],
                           axis=-1).astype(jnp.bfloat16)             # (E_T, Cin*K_pad)
    msg = jnp.dot(prod, w_ref[...], preferred_element_type=jnp.float32)   # (E_T, Cout)

    # ---- segment (scatter-mean) aggregation onto this destination tile ----
    # One-hot is built already transposed so the MXU sees native (M,K)x(K,N).
    # Padded edge slots have dstl == 0 AND all-zero bw/xs rows, so they
    # contribute exactly zero -- do not break this invariant.
    dl_row = dl_ref[0:1, :]                                           # (1, E_T) int32
    onehot_t = (lax.broadcasted_iota(jnp.int32, (tn, 1), 0) == dl_row)
    onehot_t = onehot_t.astype(jnp.float32)                           # (TN, E_T), exact 0/1
    agg = jnp.dot(onehot_t, msg, preferred_element_type=jnp.float32)  # (TN, Cout)

    # ---- root (self) transform + bias, ELU ----
    pre = agg + jnp.dot(x_ref[...], root_ref[...],
                        preferred_element_type=jnp.float32) + bias_ref[...]
    # ELU(alpha=1): exp only on the clamped negative branch.
    act = jnp.where(pre > 0, pre, jnp.exp(jnp.minimum(pre, 0.0)) - 1.0)
    act_ref[...] = act

    # ---- BatchNorm partial statistics (mask padded node rows) ----
    rows = t * tn + lax.broadcasted_iota(jnp.int32, (tn, 1), 0)
    act_v = jnp.where(rows < n_true, act, 0.0)
    ps = jnp.sum(act_v, axis=0, keepdims=True)                        # (1, Cout)
    pq = jnp.sum(act_v * act_v, axis=0, keepdims=True)
    # 8-sublane-tall partial blocks (TPU-friendly); replication divided out later.
    psum_ref[...] = jnp.broadcast_to(ps, psum_ref.shape)
    psq_ref[...] = jnp.broadcast_to(pq, psq_ref.shape)


def bn_affine_kernel(act_ref, scale_ref, shift_ref, o_ref):
    """Pure streaming BatchNorm normalization: y = act * scale + shift."""
    o_ref[...] = act_ref[...] * scale_ref[...] + shift_ref[...]


# ----------------------------- host-side glue ---------------------------------
def _spline_basis_dense_np(edge_attr, kernel_size, dim, degree=1):
    """Linear (degree-1) open B-spline basis densified over all K = ks**dim
    kernel positions (matches torch_spline_conv with is_open_spline=True)."""
    e = edge_attr.shape[0]
    k_total = kernel_size ** dim
    v = edge_attr * (kernel_size - degree)
    lo_f = np.floor(v)
    frac = (v - lo_f).astype(np.float32)
    lo = lo_f.astype(np.int64)
    basis = np.zeros((e, k_total), np.float32)
    for s in range(2 ** dim):
        b = np.ones((e,), np.float32)
        wi = np.zeros((e,), np.int64)
        off = 1
        for d in range(dim):
            k_mod = (s >> d) & 1
            wi = wi + ((lo[:, d] + k_mod) % kernel_size) * off
            off *= kernel_size
            b = b * np.where(k_mod == 1, frac[:, d], 1.0 - frac[:, d])
        np.add.at(basis, (np.arange(e), wi), b)
    return basis


def conv_block_forward(x, src, dst, edge_attr, weight, root_w, bias, gamma, beta,
                       *, kernel_size, dim, node_tile=128):
    """ConvBlock forward: SplineConv(mean aggr, root weight, bias) -> ELU -> BatchNorm1d."""
    # -------- host-side graph preprocessing (cheap O(E) numpy glue) --------
    x_np = np.asarray(x, np.float32)
    src_np = np.asarray(src, np.int64)
    dst_np = np.asarray(dst, np.int64)
    attr_np = np.asarray(edge_attr, np.float32)
    w_np = np.asarray(weight, np.float32)                        # (K, Cin, Cout)
    n, cin = x_np.shape
    k, _, cout = w_np.shape
    k_pad = max(128, int(np.ceil(k / 128.0)) * 128)              # MXU-aligned kernel-pos axis

    tn = node_tile
    n_pad = int(np.ceil(n / tn)) * tn
    num_tiles = n_pad // tn

    basis = _spline_basis_dense_np(attr_np, kernel_size, dim)    # (E, K)
    deg = np.bincount(dst_np, minlength=n).astype(np.float32)
    inv_deg = 1.0 / np.maximum(deg, 1.0)
    order = np.argsort(dst_np, kind="stable")                    # bucket edges by dst tile
    src_s, dst_s = src_np[order], dst_np[order]
    bw_s = basis[order] * inv_deg[dst_s][:, None]                # mean folded into basis

    starts = np.searchsorted(dst_s, np.arange(num_tiles) * tn)
    ends = np.searchsorted(dst_s, np.arange(num_tiles) * tn + tn)
    counts = ends - starts
    e_tile = max(16, int(np.ceil(max(int(counts.max()), 1) / 16.0)) * 16)

    # Per-tile edge streams.  Padded slots keep bw == 0 and x_src == 0, so their
    # (dstl == 0) scatter contributes exactly zero.
    x_src_flat = np.zeros((num_tiles * e_tile, cin), np.float32)
    bw_flat = np.zeros((num_tiles * e_tile, k_pad), np.float32)
    dstl_arr = np.zeros((num_tiles * 8, e_tile), np.int32)
    for t in range(num_tiles):
        a, b = int(starts[t]), int(ends[t])
        c = b - a
        x_src_flat[t * e_tile:t * e_tile + c] = x_np[src_s[a:b]]
        bw_flat[t * e_tile:t * e_tile + c, :k] = bw_s[a:b]
        dstl_arr[t * 8:(t + 1) * 8, :c] = (dst_s[a:b] - t * tn)[None, :]

    x_pad = np.zeros((n_pad, cin), np.float32)
    x_pad[:n] = x_np
    w_flat = np.zeros((cin * k_pad, cout), np.float32)           # W_i stacked, K zero-padded
    for i in range(cin):
        w_flat[i * k_pad:i * k_pad + k, :] = w_np[:, i, :]

    # Device operands: the big per-edge basis stream and the spline weights in
    # bf16 (halves the dominant HBM stream); everything else stays f32 / int32.
    x_pad = jnp.asarray(x_pad)
    x_src_flat = jnp.asarray(x_src_flat)
    bw_flat = jnp.asarray(bw_flat, dtype=jnp.bfloat16)
    dstl_arr = jnp.asarray(dstl_arr)
    w_flat = jnp.asarray(w_flat, dtype=jnp.bfloat16)
    root_f32 = jnp.asarray(root_w, jnp.float32)
    bias2 = jnp.asarray(bias, jnp.float32).reshape(1, cout)
    gamma1 = jnp.asarray(gamma, jnp.float32)
    beta1 = jnp.asarray(beta, jnp.float32)

    cparams = pltpu.CompilerParams(dimension_semantics=("parallel",),
                                   vmem_limit_bytes=32 * 1024 * 1024)

    kernel1 = functools.partial(spline_conv_elu_kernel, cin=cin, cout=cout,
                                k_pad=k_pad, tn=tn, e_tile=e_tile, n_true=n)
    act, psum, psq = pl.pallas_call(
        kernel1,
        out_shape=(jax.ShapeDtypeStruct((n_pad, cout), jnp.float32),
                   jax.ShapeDtypeStruct((num_tiles * 8, cout), jnp.float32),
                   jax.ShapeDtypeStruct((num_tiles * 8, cout), jnp.float32)),
        grid=(num_tiles,),
        in_specs=[
            pl.BlockSpec((tn, cin), lambda t: (t, 0)),             # x tile (not VMEM-resident)
            pl.BlockSpec((e_tile, cin), lambda t: (t, 0)),         # pre-gathered x[src] stream
            pl.BlockSpec((e_tile, k_pad), lambda t: (t, 0)),       # basis * 1/deg stream, bf16
            pl.BlockSpec((8, e_tile), lambda t: (t, 0)),           # tile-local dst indices
            pl.BlockSpec((cin * k_pad, cout), lambda t: (0, 0)),   # spline weights, bf16
            pl.BlockSpec((cin, cout), lambda t: (0, 0)),           # root weight
            pl.BlockSpec((1, cout), lambda t: (0, 0)),             # bias
        ],
        out_specs=[
            pl.BlockSpec((tn, cout), lambda t: (t, 0)),            # ELU activations
            pl.BlockSpec((8, cout), lambda t: (t, 0)),             # BN partial sum
            pl.BlockSpec((8, cout), lambda t: (t, 0)),             # BN partial sum of squares
        ],
        compiler_params=cparams,
    )(x_pad, x_src_flat, bw_flat, dstl_arr, w_flat, root_f32, bias2)

    # One-shot BatchNorm statistics (training mode: biased variance, eps=1e-5).
    inv_n = 1.0 / float(n)
    total = jnp.sum(psum, axis=0) * (1.0 / 8.0)                    # undo 8-row replication
    total_sq = jnp.sum(psq, axis=0) * (1.0 / 8.0)
    mean = total * inv_n
    var = total_sq * inv_n - mean * mean
    inv_std = lax.rsqrt(var + 1e-5)
    scale = (gamma1 * inv_std).reshape(1, cout)
    shift = (beta1 - mean * gamma1 * inv_std).reshape(1, cout)

    y = pl.pallas_call(
        bn_affine_kernel,
        out_shape=jax.ShapeDtypeStruct((n_pad, cout), jnp.float32),
        grid=(num_tiles,),
        in_specs=[
            pl.BlockSpec((tn, cout), lambda t: (t, 0)),
            pl.BlockSpec((1, cout), lambda t: (0, 0)),
            pl.BlockSpec((1, cout), lambda t: (0, 0)),
        ],
        out_specs=pl.BlockSpec((tn, cout), lambda t: (t, 0)),
        compiler_params=cparams,
    )(act, scale, shift)

    return y[:n]


# ----------------------------- example / check --------------------------------
if __name__ == "__main__":
    # Graph with N nodes, E edges, in_channels=4, out_channels=8, pseudo-dim=3, ks=5.
    N, E = 16, 32
    Cin, Cout = 4, 8
    DIM, KS = 3, 5
    K = KS ** DIM

    key = jax.random.PRNGKey(0)
    kx, ksrc, kdst, kattr, kw, kroot, kbias = jax.random.split(key, 7)

    x = jax.random.normal(kx, (N, Cin), jnp.float32)
    src = jax.random.randint(ksrc, (E,), 0, N)                   # edge_index[0] (source)
    dst = jax.random.randint(kdst, (E,), 0, N)                   # edge_index[1] (target)
    edge_index = jnp.stack([src, dst])
    edge_attr = jax.random.uniform(kattr, (E, DIM), jnp.float32)

    W = 0.1 * jax.random.normal(kw, (K, Cin, Cout), jnp.float32)      # spline weights
    root_w = 0.1 * jax.random.normal(kroot, (Cin, Cout), jnp.float32)
    bias = 0.1 * jax.random.normal(kbias, (Cout,), jnp.float32)
    gamma = jnp.ones((Cout,), jnp.float32)                            # BN affine init
    beta = jnp.zeros((Cout,), jnp.float32)

    out = conv_block_forward(x, edge_index[0], edge_index[1], edge_attr,
                             W, root_w, bias, gamma, beta,
                             kernel_size=KS, dim=DIM, node_tile=128)
    out = jax.block_until_ready(out)

    # Pure-JAX reference (graph formulation) for correctness.
    B_dense = jnp.asarray(_spline_basis_dense_np(np.asarray(edge_attr), KS, DIM))
    xw_r = jnp.einsum('ni,kio->nko', x, W)                            # (N, K, Cout)
    msg_r = jnp.einsum('ek,eko->eo', B_dense, xw_r[src])              # (E, Cout)
    deg_r = jax.ops.segment_sum(jnp.ones((E,), jnp.float32), dst, num_segments=N)
    agg_r = jax.ops.segment_sum(msg_r, dst, num_segments=N) / jnp.maximum(deg_r, 1.0)[:, None]
    pre_r = agg_r + x @ root_w + bias
    act_r = jnp.where(pre_r > 0, pre_r, jnp.expm1(jnp.minimum(pre_r, 0.0)))
    m_r = act_r.mean(0, keepdims=True)
    v_r = ((act_r - m_r) ** 2).mean(0, keepdims=True)
    ref = gamma * (act_r - m_r) / jnp.sqrt(v_r + 1e-5) + beta

    np.testing.assert_allclose(np.asarray(out), np.asarray(ref), rtol=2e-2, atol=2e-2)
    print("KERNEL_OK")
</pallas_src>

<mosaic_0001>
module attributes {stable_mosaic.version = 11 : i64} {
  func.func @spline_conv_elu_kernel(%arg0: i32, %arg1: memref<128x4xf32, #tpu.memory_space<vmem>>, %arg2: memref<32x4xf32, #tpu.memory_space<vmem>>, %arg3: memref<32x128xbf16, #tpu.memory_space<vmem>>, %arg4: memref<8x32xi32, #tpu.memory_space<vmem>>, %arg5: memref<512x8xbf16, #tpu.memory_space<vmem>>, %arg6: memref<4x8xf32, #tpu.memory_space<vmem>>, %arg7: memref<1x8xf32, #tpu.memory_space<vmem>>, %arg8: memref<128x8xf32, #tpu.memory_space<vmem>>, %arg9: memref<8x8xf32, #tpu.memory_space<vmem>>, %arg10: memref<8x8xf32, #tpu.memory_space<vmem>>) attributes {dimension_semantics = [#tpu.dimension_semantics<parallel>], iteration_bounds = array<i64: 1>, scalar_prefetch = 0 : i64, scratch_operands = 0 : i64, tpu.core_type = #tpu.core_type<tc>, window_params = [{transform_indices = @transform_0, window_bounds = array<i64: 128, 4>}, {transform_indices = @transform_1, window_bounds = array<i64: 32, 4>}, {transform_indices = @transform_2, window_bounds = array<i64: 32, 128>}, {transform_indices = @transform_3, window_bounds = array<i64: 8, 32>}, {pipeline_mode = #tpu.pipeline_mode<synchronous>, transform_indices = @transform_4, window_bounds = array<i64: 512, 8>}, {pipeline_mode = #tpu.pipeline_mode<synchronous>, transform_indices = @transform_5, window_bounds = array<i64: 4, 8>}, {pipeline_mode = #tpu.pipeline_mode<synchronous>, transform_indices = @transform_6, window_bounds = array<i64: 1, 8>}, {transform_indices = @transform_7, window_bounds = array<i64: 128, 8>}, {transform_indices = @transform_8, window_bounds = array<i64: 8, 8>}, {transform_indices = @transform_9, window_bounds = array<i64: 8, 8>}]} {
    %c0 = arith.constant 0 : index
    %c0_0 = arith.constant 0 : index
    %0 = vector.load %arg2[%c0, %c0_0] : memref<32x4xf32, #tpu.memory_space<vmem>>, vector<32x4xf32>
    %c0_1 = arith.constant 0 : index
    %c0_2 = arith.constant 0 : index
    %1 = vector.load %arg3[%c0_1, %c0_2] : memref<32x128xbf16, #tpu.memory_space<vmem>>, vector<32x128xbf16>
    %2 = arith.extf %1 : vector<32x128xbf16> to vector<32x128xf32>
    %3 = vector.extract_strided_slice %0 {offsets = [0, 0], sizes = [32, 1], strides = [1, 1]} : vector<32x4xf32> to vector<32x1xf32>
    %4 = vector.broadcast %3 : vector<32x1xf32> to vector<32x128xf32>
    %5 = arith.mulf %4, %2 : vector<32x128xf32>
    %6 = vector.extract_strided_slice %0 {offsets = [0, 1], sizes = [32, 1], strides = [1, 1]} : vector<32x4xf32> to vector<32x1xf32>
    %7 = vector.broadcast %6 : vector<32x1xf32> to vector<32x128xf32>
    %8 = arith.mulf %7, %2 : vector<32x128xf32>
    %9 = vector.extract_strided_slice %0 {offsets = [0, 2], sizes = [32, 1], strides = [1, 1]} : vector<32x4xf32> to vector<32x1xf32>
    %10 = vector.broadcast %9 : vector<32x1xf32> to vector<32x128xf32>
    %11 = arith.mulf %10, %2 : vector<32x128xf32>
    %12 = vector.extract_strided_slice %0 {offsets = [0, 3], sizes = [32, 1], strides = [1, 1]} : vector<32x4xf32> to vector<32x1xf32>
    %13 = vector.broadcast %12 : vector<32x1xf32> to vector<32x128xf32>
    %14 = arith.mulf %13, %2 : vector<32x128xf32>
    %15 = tpu.concatenate %5, %8, %11, %14 in 1 : vector<32x128xf32>, vector<32x128xf32>, vector<32x128xf32>, vector<32x128xf32> -> vector<32x512xf32>
    %16 = arith.truncf %15 : vector<32x512xf32> to vector<32x512xbf16>
    %c0_3 = arith.constant 0 : index
    %c0_4 = arith.constant 0 : index
    %17 = vector.load %arg5[%c0_3, %c0_4] : memref<512x8xbf16, #tpu.memory_space<vmem>>, vector<512x8xbf16>
    %cst = arith.constant dense<0.000000e+00> : vector<32x8xf32>
    %18 = tpu.matmul %16, %17, %cst {dimension_numbers = #tpu.dot_dimension_numbers<[1], [0], [0], [1], [0, 0, 1, 1], [], []>} : vector<32x512xbf16>, vector<512x8xbf16>, vector<32x8xf32> -> vector<32x8xf32>
    %c0_5 = arith.constant 0 : index
    %c0_6 = arith.constant 0 : index
    %19 = vector.load %arg4[%c0_5, %c0_6] : memref<8x32xi32, #tpu.memory_space<vmem>>, vector<1x32xi32>
    %20 = tpu.iota {dimensions = array<i32: 0>} : vector<128x1xi32>
    %21 = vector.broadcast %20 : vector<128x1xi32> to vector<128x32xi32>
    %22 = vector.broadcast %19 : vector<1x32xi32> to vector<128x32xi32>
    %23 = arith.cmpi eq, %21, %22 : vector<128x32xi32>
    %24 = arith.extui %23 : vector<128x32xi1> to vector<128x32xi32>
    %25 = arith.sitofp %24 : vector<128x32xi32> to vector<128x32xf32>
    %cst_7 = arith.constant dense<0.000000e+00> : vector<128x8xf32>
    %26 = tpu.matmul %25, %18, %cst_7 {dimension_numbers = #tpu.dot_dimension_numbers<[1], [0], [0], [1], [0, 0, 1, 1], [], []>} : vector<128x32xf32>, vector<32x8xf32>, vector<128x8xf32> -> vector<128x8xf32>
    %c0_8 = arith.constant 0 : index
    %c0_9 = arith.constant 0 : index
    %27 = vector.load %arg1[%c0_8, %c0_9] : memref<128x4xf32, #tpu.memory_space<vmem>>, vector<128x4xf32>
    %c0_10 = arith.constant 0 : index
    %c0_11 = arith.constant 0 : index
    %28 = vector.load %arg6[%c0_10, %c0_11] : memref<4x8xf32, #tpu.memory_space<vmem>>, vector<4x8xf32>
    %cst_12 = arith.constant dense<0.000000e+00> : vector<128x8xf32>
    %29 = tpu.matmul %27, %28, %cst_12 {dimension_numbers = #tpu.dot_dimension_numbers<[1], [0], [0], [1], [0, 0, 1, 1], [], []>} : vector<128x4xf32>, vector<4x8xf32>, vector<128x8xf32> -> vector<128x8xf32>
    %30 = arith.addf %26, %29 : vector<128x8xf32>
    %c0_13 = arith.constant 0 : index
    %c0_14 = arith.constant 0 : index
    %31 = vector.load %arg7[%c0_13, %c0_14] : memref<1x8xf32, #tpu.memory_space<vmem>>, vector<1x8xf32>
    %32 = vector.broadcast %31 : vector<1x8xf32> to vector<128x8xf32>
    %33 = arith.addf %30, %32 : vector<128x8xf32>
    %cst_15 = arith.constant 0.000000e+00 : f32
    %34 = vector.broadcast %cst_15 : f32 to vector<128x8xf32>
    %35 = arith.cmpf ogt, %33, %34 : vector<128x8xf32>
    %cst_16 = arith.constant 0.000000e+00 : f32
    %36 = vector.broadcast %cst_16 : f32 to vector<128x8xf32>
    %37 = arith.minimumf %33, %36 : vector<128x8xf32>
    %38 = math.exp %37 : vector<128x8xf32>
    %cst_17 = arith.constant 1.000000e+00 : f32
    %39 = vector.broadcast %cst_17 : f32 to vector<128x8xf32>
    %40 = arith.subf %38, %39 : vector<128x8xf32>
    %41 = arith.select %35, %33, %40 : vector<128x8xi1>, vector<128x8xf32>
    %c0_18 = arith.constant 0 : index
    %c0_19 = arith.constant 0 : index
    %42 = vector.load %arg8[%c0_18, %c0_19] : memref<128x8xf32, #tpu.memory_space<vmem>>, vector<128x8xf32>
    tpu.vector_store %arg8[%c0_18, %c0_19], %41 {strides = array<i32>} : memref<128x8xf32, #tpu.memory_space<vmem>>, vector<128x8xf32>,
    %c128_i32 = arith.constant 128 : i32
    %43 = arith.muli %arg0, %c128_i32 : i32
    %44 = tpu.iota {dimensions = array<i32: 0>} : vector<128x1xi32>
    %45 = vector.broadcast %43 : i32 to vector<128x1xi32>
    %46 = arith.addi %45, %44 : vector<128x1xi32>
    %c16_i32 = arith.constant 16 : i32
    %47 = vector.broadcast %c16_i32 : i32 to vector<128x1xi32>
    %48 = arith.cmpi slt, %46, %47 : vector<128x1xi32>
    %cst_20 = arith.constant 0.000000e+00 : f32
    %49 = vector.shape_cast %48 : vector<128x1xi1> to vector<128x1xi1>
    %50 = vector.broadcast %49 : vector<128x1xi1> to vector<128x8xi1>
    %51 = vector.broadcast %cst_20 : f32 to vector<128x8xf32>
    %52 = arith.select %50, %41, %51 : vector<128x8xi1>, vector<128x8xf32>
    %cst_21 = arith.constant dense<0.000000e+00> : vector<8xf32>
    %53 = vector.multi_reduction <add>, %52, %cst_21 [0] : vector<128x8xf32> to vector<8xf32>
    %54 = vector.shape_cast %53 : vector<8xf32> to vector<1x8xf32>
    %55 = arith.mulf %52, %52 : vector<128x8xf32>
    %cst_22 = arith.constant dense<0.000000e+00> : vector<8xf32>
    %56 = vector.multi_reduction <add>, %55, %cst_22 [0] : vector<128x8xf32> to vector<8xf32>
    %57 = vector.shape_cast %56 : vector<8xf32> to vector<1x8xf32>
    %58 = vector.shape_cast %54 : vector<1x8xf32> to vector<1x8xf32>
    %59 = vector.broadcast %58 : vector<1x8xf32> to vector<8x8xf32>
    %c0_23 = arith.constant 0 : index
    %c0_24 = arith.constant 0 : index
    %60 = vector.load %arg9[%c0_23, %c0_24] : memref<8x8xf32, #tpu.memory_space<vmem>>, vector<8x8xf32>
    tpu.vector_store %arg9[%c0_23, %c0_24], %59 {strides = array<i32>} : memref<8x8xf32, #tpu.memory_space<vmem>>, vector<8x8xf32>,
    %61 = vector.shape_cast %57 : vector<1x8xf32> to vector<1x8xf32>
    %62 = vector.broadcast %61 : vector<1x8xf32> to vector<8x8xf32>
    %c0_25 = arith.constant 0 : index
    %c0_26 = arith.constant 0 : index
    %63 = vector.load %arg10[%c0_25, %c0_26] : memref<8x8xf32, #tpu.memory_space<vmem>>, vector<8x8xf32>
    tpu.vector_store %arg10[%c0_25, %c0_26], %62 {strides = array<i32>} : memref<8x8xf32, #tpu.memory_space<vmem>>, vector<8x8xf32>,
    return
  }
  func.func @transform_0(%arg0: i32) -> (i32, i32) {
    %c0_i32 = arith.constant 0 : i32
    %c0_i32_0 = arith.constant 0 : i32
    return %arg0, %c0_i32 : i32, i32
  }
  func.func @transform_1(%arg0: i32) -> (i32, i32) {
    %c0_i32 = arith.constant 0 : i32
    %c0_i32_0 = arith.constant 0 : i32
    return %arg0, %c0_i32 : i32, i32
  }
  func.func @transform_2(%arg0: i32) -> (i32, i32) {
    %c0_i32 = arith.constant 0 : i32
    %c0_i32_0 = arith.constant 0 : i32
    return %arg0, %c0_i32 : i32, i32
  }
  func.func @transform_3(%arg0: i32) -> (i32, i32) {
    %c0_i32 = arith.constant 0 : i32
    %c0_i32_0 = arith.constant 0 : i32
    return %arg0, %c0_i32 : i32, i32
  }
  func.func @transform_4(%arg0: i32) -> (i32, i32) {
    %c0_i32 = arith.constant 0 : i32
    %c0_i32_0 = arith.constant 0 : i32
    %c0_i32_1 = arith.constant 0 : i32
    return %c0_i32, %c0_i32_0 : i32, i32
  }
  func.func @transform_5(%arg0: i32) -> (i32, i32) {
    %c0_i32 = arith.constant 0 : i32
    %c0_i32_0 = arith.constant 0 : i32
    %c0_i32_1 = arith.constant 0 : i32
    return %c0_i32, %c0_i32_0 : i32, i32
  }
  func.func @transform_6(%arg0: i32) -> (i32, i32) {
    %c0_i32 = arith.constant 0 : i32
    %c0_i32_0 = arith.constant 0 : i32
    %c0_i32_1 = arith.constant 0 : i32
    return %c0_i32, %c0_i32_0 : i32, i32
  }
  func.func @transform_7(%arg0: i32) -> (i32, i32) {
    %c0_i32 = arith.constant 0 : i32
    %c0_i32_0 = arith.constant 0 : i32
    return %arg0, %c0_i32 : i32, i32
  }
  func.func @transform_8(%arg0: i32) -> (i32, i32) {
    %c0_i32 = arith.constant 0 : i32
    %c0_i32_0 = arith.constant 0 : i32
    return %arg0, %c0_i32 : i32, i32
  }
  func.func @transform_9(%arg0: i32) -> (i32, i32) {
    %c0_i32 = arith.constant 0 : i32
    %c0_i32_0 = arith.constant 0 : i32
    return %arg0, %c0_i32 : i32, i32
  }
}

</mosaic_0001>

<bundles_post_ra>
// kernel: tpu_custom_call.1
= control target key start
LH: loop header
LB: loop body
LE: loop exit
PB: predicated region body
PF: predicated region fallthrough
CT: control target
= control target key end

     0   :  { %15 = vsyncpa [#allocation3], 0  ;;  %v1471_v1 = vmov 3   ;;  %v1472_v2 = vmov 2   ;;  %s1895_s0 = inlined_call_operand.vmem [shape: f32[128,4], index: 0, kind: input, shape index: {}]   ;;  %s1896_s1 = inlined_call_operand.vmem [shape: f32[32,4], index: 1, kind: input, shape index: {}]   ;;  %s1897_s2 = inlined_call_operand.vmem [shape: bf16[32,128], index: 2, kind: input, shape index: {}]   ;;  %s1898_s3 = inlined_call_operand.vmem [shape: s32[8,32], index: 3, kind: input, shape index: {}]   ;;  %s1899_s4 = inlined_call_operand.vmem [shape: bf16[512,8], index: 4, kind: input, shape index: {}]   ;;  %s1900_s5 = inlined_call_operand.vmem [shape: f32[4,8], index: 5, kind: input, shape index: {}]   ;;  %s1901_s6 = inlined_call_operand.vmem [shape: f32[1,8], index: 6, kind: input, shape index: {}]   ;;  %s1902_s7 = inlined_call_operand.vmem [shape: f32[128,8], index: 7, kind: output, shape index: {0}]   ;;  %s1903_s8 = inlined_call_operand.hbm [shape: f32[8,8], index: 8, kind: output, shape index: {1}]   ;;  %s1904_s9 = inlined_call_operand.hbm [shape: f32[8,8], index: 9, kind: output, shape index: {2}]  }
   0x1   :  { %v31_v0 = vld [vmem:[%s1896_s1] sm:$0xff]  ;;  %1373 = vset.pattern.permute.xlu1 %v1471_v1  ;;  %1372 = vset.pattern.permute.xlu0 %v1472_v2 }
   0x2   :  { %108 = vperm.xlu1 %1373, %v31_v0   ;;  %88 = vperm.xlu0 %1372, %v31_v0  }
   0x3   :  { %16 = vsyncpa [#allocation5], 0  ;;  %v1473_v3 = vmov 0   ;;  %v32_v4 = vld [vmem:[%s1896_s1 + $0x8] sm:$0xff]  ;;  %v1326_v5 = vld [vmem:[%s1899_s4 + $0x38] sm:$0xff]  ;;  %v1474_v7 = vmov 1  }
   0x4   :  { %1374 = vset.pattern.permute.xlu2 %v1473_v3  ;;  %v1342_v6 = vld [vmem:[%s1899_s4 + $0xb8] sm:$0xff]  ;;  %v33_v9 = vld [vmem:[%s1896_s1 + $0x10] sm:$0xff]  ;;  %391 = vmatpush.bf16.msra.mxu0 %v1326_v5  ;;  %v1324_v12 = vld [vmem:[%s1899_s4 + $0x28] sm:$0xff]  ;;  %vm600_vm0 = vcmask 1043456   ;;  %vm551_vm1 = vcmask 31744   ;;  %vm669_vm4 = vcmask 261120  }
   0x5   :  { %45 = vperm.xlu2 %1374, %v31_v0   ;;  %v1350_v8 = vld [vmem:[%s1899_s4 + $0xf8] sm:$0xff]  ;;  %v1325_v10 = vld [vmem:[%s1899_s4 + $0x30] sm:$0xff]  ;;  %429 = vmatpush.bf16.msra.mxu2 %v1342_v6  ;;  %v1323_v13 = vld [vmem:[%s1899_s4 + $0x20] sm:$0xff]  ;;  %s1110_s21 = sshll.u32 %s1904_s9, 4  ;;  %s1111_s21 = int_to_ptr.hbm [resolvable:$true] %s1110_s21 }
   0x6   :  { %448 = vmatpush.bf16.msra.mxu3 %v1350_v8  ;;  %v34_v11 = vld [vmem:[%s1896_s1 + $0x18] sm:$0xff]  ;;  %v1321_v15 = vld [vmem:[%s1899_s4 + $0x10] sm:$0xff]  ;;  %v1320_v18 = vld [vmem:[%s1899_s4 + $0x8] sm:$0xff] }
   0x7   :  { %v1322_v14 = vld [vmem:[%s1899_s4 + $0x18] sm:$0xff]  ;;  %v1341_v16 = vld [vmem:[%s1899_s4 + $0xb0] sm:$0xff]  ;;  %v1340_v19 = vld [vmem:[%s1899_s4 + $0xa8] sm:$0xff] }
   0x8   :  { %392 = vmatpush.bf16.msra.mxu0 %v1325_v10  ;;  %v1349_v17 = vld [vmem:[%s1899_s4 + $0xf0] sm:$0xff]  ;;  %v1334_v20 = vld [vmem:[%s1899_s4 + $0x78] sm:$0xff]  ;;  %v1348_v21 = vld [vmem:[%s1899_s4 + $0xe8] sm:$0xff] }
   0x9   :  { %430 = vmatpush.bf16.msra.mxu2 %v1341_v16  ;;  %410 = vmatpush.bf16.msra.mxu1 %v1334_v20  ;;  %v1319_v22 = vld [vmem:[%s1899_s4] sm:$0xff]  ;;  %v1333_v25 = vld [vmem:[%s1899_s4 + $0x70] sm:$0xff]  ;;  %v1338_v26 = vld [vmem:[%s1899_s4 + $0x98] sm:$0xff] }
   0xa   :  { %112 = vperm.xlu1 %1373, %v32_v4   ;;  %92 = vperm.xlu0 %1372, %v32_v4   ;;  %v1339_v23 = vld [vmem:[%s1899_s4 + $0xa0] sm:$0xff]  ;;  %v1346_v27 = vld [vmem:[%s1899_s4 + $0xd8] sm:$0xff]  ;;  %v1332_v28 = vld [vmem:[%s1899_s4 + $0x68] sm:$0xff] }
   0xb   :  { %449 = vmatpush.bf16.msra.mxu3 %v1349_v17  ;;  %v1347_v24 = vld [vmem:[%s1899_s4 + $0xe0] sm:$0xff]  ;;  %v1337_v29 = vld [vmem:[%s1899_s4 + $0x90] sm:$0xff]  ;;  %v1336_v32 = vld [vmem:[%s1899_s4 + $0x88] sm:$0xff] }
   0xc   :  { %393 = vmatpush.bf16.msra.mxu0 %v1324_v12  ;;  %v1345_v30 = vld [vmem:[%s1899_s4 + $0xd0] sm:$0xff]  ;;  %v1331_v31 = vld [vmem:[%s1899_s4 + $0x60] sm:$0xff]  ;;  %v1344_v33 = vld [vmem:[%s1899_s4 + $0xc8] sm:$0xff] }
   0xd   :  { %50 = vperm.xlu2 %1374, %v32_v4   ;;  %431 = vmatpush.bf16.msra.mxu2 %v1340_v19  ;;  %v1330_v34 = vld [vmem:[%s1899_s4 + $0x58] sm:$0xff]  ;;  %v1335_v35 = vld [vmem:[%s1899_s4 + $0x80] sm:$0xff]  ;;  %v1329_v37 = vld [vmem:[%s1899_s4 + $0x50] sm:$0xff] }
   0xe   :  { %411 = vmatpush.bf16.msra.mxu1 %v1333_v25  ;;  %v1343_v36 = vld [vmem:[%s1899_s4 + $0xc0] sm:$0xff]  ;;  %v1328_v41 = vld [vmem:[%s1899_s4 + $0x48] sm:$0xff] }
   0xf   :  { %450 = vmatpush.bf16.msra.mxu3 %v1348_v21  ;;  %v1352_v38 = vld [vmem:[%s1897_s2] sm:$0xff]   ;;  %v1359_v63 = vld [vmem:[%s1897_s2 + $0x8] sm:$0xff]  }
  0x10   :  { %394 = vmatpush.bf16.msra.mxu0 %v1323_v13  ;;  %v1353_v40 = vunpack.c.l.bf16 %v1352_v38  ;;  %v1354_v42 = vunpack.c.h.bf16 %v1352_v38  ;;  %v1327_v44 = vld [vmem:[%s1899_s4 + $0x40] sm:$0xff]  ;;  %s1099_s4 = sshll.u32 %s1903_s8, 4  ;;  %s1477_s8 = smov [#allocation4]   ;;  %s1100_s4 = int_to_ptr.hbm [resolvable:$true] %s1099_s4 }
  0x11   :  { %432 = vmatpush.bf16.msra.mxu2 %v1339_v23  ;;  %s1108_s18 = sshll.u32 %s1477_s8, 4  ;;  %s1109_s18 = int_to_ptr.vmem [resolvable:$true] %s1108_s18 }
  0x12   :  { %1376 = vset.pattern.permute.xlu1 %v1474_v7  ;;  %1375 = vset.pattern.permute.xlu0 %v1474_v7 }
  0x13   :  { %72 = vperm.xlu1 %1376, %v32_v4   ;;  %68 = vperm.xlu0 %1375, %v31_v0  }
  0x14   :  { %395 = vmatpush.bf16.msra.mxu0 %v1322_v14  ;;  %451 = vmatpush.bf16.msra.mxu3 %v1347_v24 }
  0x15   :  { %1377 = vset.pattern.permute.xlu2 %v1472_v2  ;;  %433 = vmatpush.bf16.msra.mxu2 %v1338_v26 }
  0x16   :  { %96 = vperm.xlu2 %1377, %v33_v9   ;;  %412 = vmatpush.bf16.msra.mxu1 %v1332_v28  ;;  %v542_v28 = vld [vmem:[%s1895_s0 + $0x40] sm:$0xff] }
  0x18   :  { %396 = vmatpush.bf16.msra.mxu0 %v1321_v15  ;;  %452 = vmatpush.bf16.msra.mxu3 %v1346_v27  ;;  %v534_v27 = vld [vmem:[%s1895_s0] sm:$0xff] }
  0x19   :  { %434 = vmatpush.bf16.msra.mxu2 %v1337_v29 }
  0x1a   :  { %413 = vmatpush.bf16.msra.mxu1 %v1331_v31 }
  0x1b   :  { %1378 = vset.pattern.permute.xlu1 %v1472_v2  ;;  %1380 = vset.pattern.permute.xlu0 %v1471_v1  ;;  %v1357_v2 = vunpack.c.l.bf16 %v1359_v63 }
  0x1c   :  { %100 = vperm.xlu1 %1378, %v34_v11   ;;  %120 = vperm.xlu0 %1380, %v34_v11  }
  0x1d   :  { %397 = vmatpush.bf16.msra.mxu0 %v1320_v18  ;;  %453 = vmatpush.bf16.msra.mxu3 %v1345_v30 }
  0x1e   :  { %1379 = vset.pattern.permute.xlu2 %v1471_v1  ;;  %435 = vmatpush.bf16.msra.mxu2 %v1336_v32 }
  0x1f   :  { %116 = vperm.xlu2 %1379, %v33_v9   ;;  %414 = vmatpush.bf16.msra.mxu1 %v1330_v34  ;;  %v543_v34 = vld [vmem:[%s1895_s0 + $0x48] sm:$0xff] }
  0x21   :  { %398 = vmatpush.bf16.msra.mxu0 %v1319_v22  ;;  %454 = vmatpush.bf16.msra.mxu3 %v1344_v33  ;;  %v550_v22 = vld [vmem:[%s1900_s5] sm:$0xf]  ;;  %v535_v33 = vld [vmem:[%s1895_s0 + $0x8] sm:$0xff] }
  0x22   :  { %436 = vmatpush.bf16.msra.mxu2 %v1335_v35 }
  0x23   :  { %415 = vmatpush.bf16.msra.mxu1 %v1329_v37 }
  0x24   :  { %1381 = vset.pattern.permute.xlu1 %v1473_v3 }
  0x25   :  { %55 = vperm.xlu1 %1381, %v33_v9   ;;  %455 = vmatpush.bf16.msra.mxu3 %v1343_v36 }
  0x26   :  { %1360 = vmatpush.msk.msrb.mxu2 %vm600_vm0, %v550_v22  ;;  %1270 = vmatpush.msk.msrb.mxu0 %vm600_vm0, %v550_v22  ;;  %v549_v22 = vld [vmem:[%s1895_s0 + $0x78] sm:$0xff] }
  0x27   :  { %1382 = vset.pattern.permute.xlu2 %v1473_v3  ;;  %416 = vmatpush.bf16.msra.mxu1 %v1328_v41  ;;  %v1358_v3 = vunpack.c.h.bf16 %v1359_v63  ;;  %v536_v41 = vld [vmem:[%s1895_s0 + $0x10] sm:$0xff]  ;;  %v1475_v63 = vmov 0.0  }
  0x28   :  { %60 = vperm.xlu2 %1382, %v34_v11  }
  0x2b   :  { %417 = vmatpush.bf16.msra.mxu1 %v1327_v44 }
  0x2d   :  { %1383 = vset.pattern.permute.xlu1 %v1474_v7 }
  0x2e   :  { %76 = vperm.xlu1 %1383, %v33_v9  }
  0x30   :  { %1384 = vset.pattern.permute.xlu2 %v1474_v7 }
  0x31   :  { %80 = vperm.xlu2 %1384, %v34_v11  }
  0x5f   :  { %v46_v39 = vpop.permute.xlu2 %45 }
  0x60   :  { %v63_v43 = vmul.f32 %v1353_v40, %v46_v39  ;;  %v544_v39 = vld [vmem:[%s1895_s0 + $0x50] sm:$0xff] }
  0x67   :  { %v51_v45 = vpop.permute.xlu2 %50 }
  0x68   :  { %v64_v46 = vmul.f32 %v1354_v42, %v51_v45 }
  0x6a   :  { %v127_v47 = vpack.c.bf16 %v64_v46, %v63_v43 }
  0x6c   :  { %399 = vmatmul.bf16.vlgmr.msra.gmra.mxu0 %v127_v47 }
  0x70   :  { %v97_v56 = vpop.permute.xlu2 %96 }
  0x71   :  { %v105_v7 = vmul.f32 %v1357_v2, %v97_v56 }
  0x74   :  { %v109_v48 = vpop.permute.xlu1 %108  ;;  %v89_v49 = vpop.permute.xlu0 %88 }
  0x75   :  { %v103_v50 = vmul.f32 %v1353_v40, %v89_v49  ;;  %v123_v53 = vmul.f32 %v1353_v40, %v109_v48 }
  0x79   :  { %v117_v1 = vpop.permute.xlu2 %116 }
  0x7a   :  { %v125_v4 = vmul.f32 %v1357_v2, %v117_v1 }
  0x7c   :  { %v113_v51 = vpop.permute.xlu1 %112  ;;  %v93_v52 = vpop.permute.xlu0 %92 }
  0x7d   :  { %v124_v54 = vmul.f32 %v1354_v42, %v113_v51  ;;  %v104_v55 = vmul.f32 %v1354_v42, %v93_v52  ;;  %v545_v52 = vld [vmem:[%s1895_s0 + $0x58] sm:$0xff] }
  0x7f   :  { %v129_v57 = vpack.c.bf16 %v104_v55, %v103_v50  ;;  %v130_v58 = vpack.c.bf16 %v124_v54, %v123_v53  ;;  %v1677_v54 = vld [vmem:[%s1898_s3] ss:$0 sm:$0xff]  ;;  %s1476_s3 = smov [#allocation2]  }
  0x80   :  { %s1827_s14 = sshll.u32 %s1476_s3, 4  ;;  %s1098_s14 = int_to_ptr.vmem [resolvable:$true] %s1827_s14 }
  0x81   :  { %437 = vmatmul.bf16.vlgmr.msra.gmra.mxu2 %v129_v57  ;;  %456 = vmatmul.bf16.vlgmr.msra.gmra.mxu3 %v130_v58  ;;  %v537_v58 = vld [vmem:[%s1895_s0 + $0x18] sm:$0xff] }
  0x82   :  { %v61_v12 = vpop.permute.xlu2 %60 }
  0x83   :  { %v66_v13 = vmul.f32 %v1358_v3, %v61_v12 }
  0x85   :  { %v73_v59 = vpop.permute.xlu1 %72  ;;  %v69_v60 = vpop.permute.xlu0 %68 }
  0x86   :  { %v84_v61 = vmul.f32 %v1354_v42, %v73_v59  ;;  %v83_v62 = vmul.f32 %v1353_v40, %v69_v60  ;;  %v468_v40 = vlaneseq }
  0x88   :  { %v128_v0 = vpack.c.bf16 %v84_v61, %v83_v62  ;;  %v1669_v45 = vshrl.u32 %v468_v40, 7 }
  0x8a   :  { %418 = vmatmul.bf16.vlgmr.msra.gmra.mxu1 %v128_v0  ;;  %v477_v55 = vadd.s32 64, %v1669_v45  ;;  %vm486_vm2 = vcmp.eq.s32.totalorder %v1669_v45, %v1677_v54 }
  0x8b   :  { %v81_v17 = vpop.permute.xlu2 %80  ;;  %v1254_v0 = vsel %vm486_vm2, 1.0, %v1475_v63 }
  0x8c   :  { %v86_v18 = vmul.f32 %v1358_v3, %v81_v17  ;;  %vm494_vm3 = vcmp.eq.s32.totalorder %v477_v55, %v1677_v54  ;;  %v540_v17 = vld [vmem:[%s1895_s0 + $0x30] sm:$0xff] }
  0x8d   :  { %v1262_v1 = vsel %vm494_vm3, 1.0, %v1475_v63  ;;  %vm899_vm3 = vcmask 64512  }
  0x8e   :  { %v101_v5 = vpop.permute.xlu1 %100  ;;  %v121_v6 = vpop.permute.xlu0 %120 }
  0x8f   :  { %v106_v8 = vmul.f32 %v1358_v3, %v101_v5  ;;  %v126_v9 = vmul.f32 %v1358_v3, %v121_v6  ;;  %v478_v3 = vadd.s32 72, %v1669_v45  ;;  %v538_v5 = vld [vmem:[%s1895_s0 + $0x20] sm:$0xff] }
  0x91   :  { %v133_v10 = vpack.c.bf16 %v106_v8, %v105_v7  ;;  %v134_v11 = vpack.c.bf16 %v126_v9, %v125_v4  ;;  %v546_v4 = vld [vmem:[%s1895_s0 + $0x60] sm:$0xff]  ;;  %vm495_vm6 = vcmp.eq.s32.totalorder %v478_v3, %v1677_v54  ;;  %v479_v8 = vadd.s32 80, %v1669_v45 }
  0x92   :  { %v1263_v7 = vsel %vm495_vm6, 1.0, %v1475_v63  ;;  %v471_v9 = vadd.s32 16, %v1669_v45 }
  0x93   :  { %442 = vmatmul.bf16.gmra.mxu2 %v133_v10  ;;  %461 = vmatmul.bf16.gmra.mxu3 %v134_v11  ;;  %v547_v10 = vld [vmem:[%s1895_s0 + $0x68] sm:$0xff]  ;;  %vm496_vm7 = vcmp.eq.s32.totalorder %v479_v8, %v1677_v54 }
  0x94   :  { %v539_v11 = vld [vmem:[%s1895_s0 + $0x28] sm:$0xff]  ;;  %vm488_vm8 = vcmp.eq.s32.totalorder %v471_v9, %v1677_v54  ;;  %v1264_v12 = vsel %vm496_vm7, 1.0, %v1475_v63 }
  0x97   :  { %v56_v14 = vpop.permute.xlu1 %55 }
  0x98   :  { %v65_v15 = vmul.f32 %v1357_v2, %v56_v14  ;;  %v480_v14 = vadd.s32 88, %v1669_v45 }
  0x9a   :  { %v131_v16 = vpack.c.bf16 %v66_v13, %v65_v15  ;;  %v1256_v13 = vsel %vm488_vm8, 1.0, %v1475_v63  ;;  %v472_v15 = vadd.s32 24, %v1669_v45  ;;  %vm497_vm9 = vcmp.eq.s32.totalorder %v480_v14, %v1677_v54 }
  0x9c   :  { %404 = vmatmul.bf16.gmra.mxu0 %v131_v16  ;;  %v548_v16 = vld [vmem:[%s1895_s0 + $0x70] sm:$0xff]  ;;  %vm489_vm10 = vcmp.eq.s32.totalorder %v472_v15, %v1677_v54 }
  0xa0   :  { %v77_v19 = vpop.permute.xlu1 %76 }
  0xa1   :  { %v85_v20 = vmul.f32 %v1357_v2, %v77_v19  ;;  %v470_v2 = vadd.s32 8, %v1669_v45  ;;  %v1257_v19 = vsel %vm489_vm10, 1.0, %v1475_v63 }
  0xa3   :  { %v132_v21 = vpack.c.bf16 %v86_v18, %v85_v20  ;;  %1279 = vmatmul.msk.f32.vlgmr.msrb.gmra.mxu2 %vm551_vm1, %v542_v28  ;;  %vm487_vm5 = vcmp.eq.s32.totalorder %v470_v2, %v1677_v54  ;;  %v1265_v18 = vsel %vm497_vm9, 1.0, %v1475_v63  ;;  %v481_v20 = vadd.s32 96, %v1669_v45 }
  0xa4   :  { %v1255_v6 = vsel %vm487_vm5, 1.0, %v1475_v63 }
  0xa5   :  { %423 = vmatmul.bf16.gmra.mxu1 %v132_v21  ;;  %v473_v21 = vadd.s32 32, %v1669_v45  ;;  %vm498_vm11 = vcmp.eq.s32.totalorder %v481_v20, %v1677_v54 }
  0xa7   :  { %vm490_vm12 = vcmp.eq.s32.totalorder %v473_v21, %v1677_v54 }
  0xab   :  { %1280 = vmatmul.msk.f32.gmra.mxu2 %vm551_vm1, %v543_v34  ;;  %v484_v34 = vadd.s32 120, %v1669_v45 }
  0xac   :  { %1271 = vmatmul.msk.f32.vlgmr.msrb.gmra.mxu0 %vm551_vm1, %v534_v27  ;;  %v474_v27 = vadd.s32 40, %v1669_v45 }
  0xae   :  { %vm491_vm14 = vcmp.eq.s32.totalorder %v474_v27, %v1677_v54 }
  0xb3   :  { %1281 = vmatmul.msk.f32.gmra.mxu2 %vm551_vm1, %v544_v39 }
  0xb4   :  { %1272 = vmatmul.msk.f32.gmra.mxu0 %vm551_vm1, %v535_v33 }
  0xbb   :  { %1282 = vmatmul.msk.f32.gmra.mxu2 %vm551_vm1, %v545_v52 }
  0xbc   :  { %1273 = vmatmul.msk.f32.gmra.mxu0 %vm551_vm1, %v536_v41  ;;  %v1783_v41 = vld [vmem:[%s1901_s6] ss:$0 sm:$0xff] }
  0xc3   :  { %1283 = vmatmul.msk.f32.gmra.mxu2 %vm551_vm1, %v546_v4 }
  0xc4   :  { %1274 = vmatmul.msk.f32.gmra.mxu0 %vm551_vm1, %v537_v58 }
  0xcb   :  { %1284 = vmatmul.msk.f32.gmra.mxu2 %vm551_vm1, %v547_v10 }
  0xcc   :  { %1275 = vmatmul.msk.f32.gmra.mxu0 %vm551_vm1, %v538_v5 }
  0xd3   :  { %1285 = vmatmul.msk.f32.gmra.mxu2 %vm551_vm1, %v548_v16 }
  0xd4   :  { %1276 = vmatmul.msk.f32.gmra.mxu0 %vm551_vm1, %v539_v11 }
  0xdb   :  { %1286 = vmatmul.msk.f32.gmra.mxu2 %vm551_vm1, %v549_v22 }
  0xdc   :  { %1277 = vmatmul.msk.f32.gmra.mxu0 %vm551_vm1, %v540_v17 }
  0xe9   :  { %v400_v23 = vpop.f32.mrf.mxu0 }
  0xf1   :  { %v402_v29 = vpop.f32.mrf.mxu0 }
 0x104   :  { %v438_v24 = vpop.f32.mrf.mxu2  ;;  %v457_v26 = vpop.f32.mrf.mxu3 }
 0x107   :  { %v419_v25 = vpop.f32.mrf.mxu1 }
 0x108   :  { %v420_v49 = vadd.f32 %v419_v25, %v400_v23  ;;  %v541_v23 = vld [vmem:[%s1895_s0 + $0x38] sm:$0xff]  ;;  %v1258_v25 = vsel %vm490_vm12, 1.0, %v1475_v63 }
 0x109   :  { %1278 = vmatmul.msk.f32.gmra.mxu0 %vm551_vm1, %v541_v23  ;;  %vm501_vm1 = vcmp.eq.s32.totalorder %v484_v34, %v1677_v54 }
 0x10a   :  { %v439_v59 = vadd.f32 %v438_v24, %v420_v49  ;;  %v1266_v24 = vsel %vm498_vm11, 1.0, %v1475_v63 }
 0x10c   :  { %v440_v30 = vpop.f32.mrf.mxu2  ;;  %v459_v32 = vpop.f32.mrf.mxu3  ;;  %v458_v62 = vadd.f32 %v457_v26, %v439_v59  ;;  %v482_v26 = vadd.s32 104, %v1669_v45 }
 0x10e   :  { %vm499_vm13 = vcmp.eq.s32.totalorder %v482_v26, %v1677_v54 }
 0x10f   :  { %v421_v31 = vpop.f32.mrf.mxu1  ;;  %v1267_v28 = vsel %vm499_vm13, 1.0, %v1475_v63 }
 0x110   :  { %v422_v46 = vadd.f32 %v421_v31, %v402_v29  ;;  %v1259_v29 = vsel %vm491_vm14, 1.0, %v1475_v63  ;;  %v475_v31 = vadd.s32 48, %v1669_v45 }
 0x112   :  { %v441_v56 = vadd.f32 %v440_v30, %v422_v46  ;;  %v483_v30 = vadd.s32 112, %v1669_v45  ;;  %vm492_vm0 = vcmp.eq.s32.totalorder %v475_v31, %v1677_v54 }
 0x113   :  { %v1260_v33 = vsel %vm492_vm0, 1.0, %v1475_v63 }
 0x114   :  { %v460_v61 = vadd.f32 %v459_v32, %v441_v56  ;;  %vm500_vm15 = vcmp.eq.s32.totalorder %v483_v30, %v1677_v54 }
 0x115   :  { %v1268_v32 = vsel %vm500_vm15, 1.0, %v1475_v63 }
 0x116   :  { %v443_v36 = vpop.f32.mrf.mxu2  ;;  %v462_v38 = vpop.f32.mrf.mxu3 }
 0x119   :  { %v405_v35 = vpop.f32.mrf.mxu0 }
 0x11e   :  { %v445_v48 = vpop.f32.mrf.mxu2  ;;  %v464_v53 = vpop.f32.mrf.mxu3 }
 0x121   :  { %v407_v43 = vpop.f32.mrf.mxu0 }
 0x122   :  { %v424_v37 = vpop.f32.mrf.mxu1 }
 0x123   :  { %v425_v42 = vadd.f32 %v424_v37, %v405_v35  ;;  %v476_v35 = vadd.s32 56, %v1669_v45 }
 0x125   :  { %v444_v50 = vadd.f32 %v443_v36, %v425_v42  ;;  %vm493_vm2 = vcmp.eq.s32.totalorder %v476_v35, %v1677_v54  ;;  %v1269_v36 = vsel %vm501_vm1, 1.0, %v1475_v63 }
 0x126   :  { %v1261_v37 = vsel %vm493_vm2, 1.0, %v1475_v63  ;;  %v645_v39 = vpop.f32.mrf.mxu2 }
 0x127   :  { %v463_v60 = vadd.f32 %v462_v38, %v444_v50 }
 0x129   :  { %v621_v38 = vpop.f32.mrf.mxu0 }
 0x12a   :  { %v426_v44 = vpop.f32.mrf.mxu1 }
 0x12b   :  { %v427_v47 = vadd.f32 %v426_v44, %v407_v43 }
 0x12d   :  { %v446_v51 = vadd.f32 %v445_v48, %v427_v47 }
 0x12e   :  { %v648_v43 = vpop.f32.mrf.mxu2 }
 0x12f   :  { %v465_v57 = vadd.f32 %v464_v53, %v446_v51 }
 0x131   :  { %730 = vmatpush.msrb.mxu1 %v465_v57  ;;  %1361 = vmatpush.msrb.mxu3 %v465_v57  ;;  %v624_v40 = vpop.f32.mrf.mxu0 }
 0x133   :  { %731 = vmatpush.msrb.mxu1 %v463_v60  ;;  %1362 = vmatpush.msrb.mxu3 %v463_v60 }
 0x135   :  { %732 = vmatpush.msrb.mxu1 %v460_v61  ;;  %1363 = vmatpush.msrb.mxu3 %v460_v61 }
 0x136   :  { %v651_v54 = vpop.f32.mrf.mxu2 }
 0x137   :  { %733 = vmatpush.msrb.mxu1 %v458_v62  ;;  %1364 = vmatpush.msrb.mxu3 %v458_v62 }
 0x138   :  { %1287 = vmatmul.msk.f32.vlgmr.msrb.gmra.mxu1 %vm669_vm4, %v1254_v0  ;;  %1295 = vmatmul.msk.f32.vlgmr.msrb.gmra.mxu3 %vm669_vm4, %v1262_v1 }
 0x139   :  { %v627_v46 = vpop.f32.mrf.mxu0 }
 0x140   :  { %1288 = vmatmul.msk.f32.gmra.mxu1 %vm669_vm4, %v1255_v6  ;;  %1296 = vmatmul.msk.f32.gmra.mxu3 %vm669_vm4, %v1263_v7  ;;  %v654_v7 = vpop.f32.mrf.mxu2 }
 0x141   :  { %v630_v60 = vpop.f32.mrf.mxu0 }
 0x148   :  { %1297 = vmatmul.msk.f32.gmra.mxu3 %vm669_vm4, %v1264_v12  ;;  %1289 = vmatmul.msk.f32.gmra.mxu1 %vm669_vm4, %v1256_v13 }
 0x150   :  { %1298 = vmatmul.msk.f32.gmra.mxu3 %vm669_vm4, %v1265_v18  ;;  %1290 = vmatmul.msk.f32.gmra.mxu1 %vm669_vm4, %v1257_v19  ;;  %v633_v19 = vpop.f32.mrf.mxu0 }
 0x158   :  { %1299 = vmatmul.msk.f32.gmra.mxu3 %vm669_vm4, %v1266_v24  ;;  %1291 = vmatmul.msk.f32.gmra.mxu1 %vm669_vm4, %v1258_v25 }
 0x160   :  { %1300 = vmatmul.msk.f32.gmra.mxu3 %vm669_vm4, %v1267_v28  ;;  %1292 = vmatmul.msk.f32.gmra.mxu1 %vm669_vm4, %v1259_v29 }
 0x168   :  { %1301 = vmatmul.msk.f32.gmra.mxu3 %vm669_vm4, %v1268_v32  ;;  %1293 = vmatmul.msk.f32.gmra.mxu1 %vm669_vm4, %v1260_v33 }
 0x170   :  { %1302 = vmatmul.msk.f32.gmra.mxu3 %vm669_vm4, %v1269_v36  ;;  %1294 = vmatmul.msk.f32.gmra.mxu1 %vm669_vm4, %v1261_v37  ;;  %v657_v37 = vpop.f32.mrf.mxu2 }
 0x1b5   :  { %v735_v42 = vpop.f32.mrf.mxu1 }
 0x1b6   :  { %v736_v44 = vadd.f32 %v735_v42, %v621_v38 }
 0x1b8   :  { %v787_v45 = vadd.f32 %v1783_v41, %v736_v44 }
 0x1ba   :  { %v819_v47 = vmin.f32 %v787_v45, 0.0  ;;  %vm803_vm4 = vcmp.gt.f32.partialorder %v787_v45, 0.0 }
 0x1bb   :  { %v759_v48 = vpop.f32.mrf.mxu3 }
 0x1bc   :  { %v835_v49 = vmul.f32 1.442695, %v819_v47  ;;  %v760_v50 = vadd.f32 %v759_v48, %v645_v39 }
 0x1bd   :  { %v738_v51 = vpop.f32.mrf.mxu1 }
 0x1be   :  { %1387 = vpow2.f32 %v835_v49  ;;  %v739_v52 = vadd.f32 %v738_v51, %v624_v40  ;;  %v795_v53 = vadd.f32 %v1783_v41, %v760_v50  ;;  %v636_v51 = vpop.f32.mrf.mxu0 }
 0x1c0   :  { %v788_v55 = vadd.f32 %v1783_v41, %v739_v52  ;;  %v827_v56 = vmin.f32 %v795_v53, 0.0  ;;  %vm811_vm5 = vcmp.gt.f32.partialorder %v795_v53, 0.0 }
 0x1c2   :  { %v820_v57 = vmin.f32 %v788_v55, 0.0  ;;  %v851_v58 = vmul.f32 1.442695, %v827_v56  ;;  %vm804_vm6 = vcmp.gt.f32.partialorder %v788_v55, 0.0 }
 0x1c3   :  { %v762_v59 = vpop.f32.mrf.mxu3 }
 0x1c4   :  { %v1388_v61 = vpop.eup %1387  ;;  %v837_v62 = vmul.f32 1.442695, %v820_v57  ;;  %1389 = vpow2.f32 %v851_v58  ;;  %v763_v63 = vadd.f32 %v762_v59, %v648_v43 }
 0x1c5   :  { %v1303_v0 = vadd.f32 -1.0, %v1388_v61  ;;  %v741_v1 = vpop.f32.mrf.mxu1 }
 0x1c6   :  { %1391 = vpow2.f32 %v837_v62  ;;  %v796_v2 = vadd.f32 %v1783_v41, %v763_v63  ;;  %v742_v3 = vadd.f32 %v741_v1, %v627_v46 }
 0x1c7   :  { %v883_v4 = vsel %vm803_vm4, %v787_v45, %v1303_v0 }
 0x1c8   :  { %900 = vst.msk [vmem:[%s1902_s7] sm:$0xff] %vm899_vm3, %v883_v4  ;;  %v828_v5 = vmin.f32 %v796_v2, 0.0  ;;  %v789_v6 = vadd.f32 %v1783_v41, %v742_v3  ;;  %v1035_v22 = vmul.f32 %v883_v4, %v883_v4  ;;  %v998_v24 = vsel %vm899_vm3, %v883_v4, 0.0 }
 0x1c9   :  { %vm812_vm7 = vcmp.gt.f32.partialorder %v796_v2, 0.0 }
 0x1ca   :  { %v1390_v8 = vpop.eup %1389  ;;  %v853_v9 = vmul.f32 1.442695, %v828_v5  ;;  %v821_v11 = vmin.f32 %v789_v6, 0.0  ;;  %v1051_v33 = vsel %vm899_vm3, %v1035_v22, 0.0  ;;  %vm805_vm8 = vcmp.gt.f32.partialorder %v789_v6, 0.0  ;;  %v660_v5 = vpop.f32.mrf.mxu2 }
 0x1cb   :  { %v1311_v10 = vadd.f32 -1.0, %v1390_v8  ;;  %v765_v12 = vpop.f32.mrf.mxu3 }
 0x1cc   :  { %v1392_v13 = vpop.eup %1391  ;;  %1393 = vpow2.f32 %v853_v9  ;;  %v766_v14 = vadd.f32 %v765_v12, %v651_v54  ;;  %v839_v17 = vmul.f32 1.442695, %v821_v11 }
 0x1cd   :  { %v1304_v15 = vadd.f32 -1.0, %v1392_v13  ;;  %v891_v16 = vsel %vm811_vm5, %v795_v53, %v1311_v10  ;;  %v744_v18 = vpop.f32.mrf.mxu1 }
 0x1ce   :  { %908 = vst.msk [vmem:[%s1902_s7 + $0x40] sm:$0xff] %vm899_vm3, %v891_v16  ;;  %v797_v20 = vadd.f32 %v1783_v41, %v766_v14  ;;  %v745_v21 = vadd.f32 %v744_v18, %v630_v60  ;;  %1395 = vpow2.f32 %v839_v17  ;;  %v639_v16 = vpop.f32.mrf.mxu0 }
 0x1cf   :  { %v884_v23 = vsel %vm804_vm6, %v788_v55, %v1304_v15 }
 0x1d0   :  { %901 = vst.msk [vmem:[%s1902_s7 + $0x8] sm:$0xff] %vm899_vm3, %v884_v23  ;;  %v999_v25 = vsel %vm899_vm3, %v884_v23, 0.0  ;;  %v1036_v26 = vmul.f32 %v884_v23, %v884_v23  ;;  %v829_v27 = vmin.f32 %v797_v20, 0.0  ;;  %v1806_v28 = vadd.f32 %v1783_v41, %v745_v21 }
 0x1d1   :  { %v1000_v29 = vadd.f32 %v999_v25, %v998_v24  ;;  %vm813_vm9 = vcmp.gt.f32.partialorder %v797_v20, 0.0 }
 0x1d2   :  { %v1394_v30 = vpop.eup %1393  ;;  %v1052_v31 = vsel %vm899_vm3, %v1036_v26, 0.0  ;;  %v855_v32 = vmul.f32 1.442695, %v829_v27  ;;  %v822_v35 = vmin.f32 %v1806_v28, 0.0  ;;  %vm806_vm10 = vcmp.gt.f32.partialorder %v1806_v28, 0.0 }
 0x1d3   :  { %v1312_v34 = vadd.f32 -1.0, %v1394_v30  ;;  %v768_v36 = vpop.f32.mrf.mxu3  ;;  %v1029_v38 = vrot.slane %v1000_v29, 4  ;;  %v1053_v40 = vadd.f32 %v1052_v31, %v1051_v33 }
 0x1d4   :  { %1397 = vpow2.f32 %v855_v32  ;;  %v769_v39 = vadd.f32 %v768_v36, %v654_v7  ;;  %v1396_v42 = vpop.eup %1395  ;;  %v841_v44 = vmul.f32 1.442695, %v822_v35  ;;  %v663_v32 = vpop.f32.mrf.mxu2 }
 0x1d5   :  { %v892_v43 = vsel %vm812_vm7, %v796_v2, %v1312_v34  ;;  %v747_v45 = vpop.f32.mrf.mxu1  ;;  %v1030_v46 = vadd.f32 %v1029_v38, %v1000_v29  ;;  %v1305_v47 = vadd.f32 -1.0, %v1396_v42  ;;  %v1082_v50 = vrot.slane %v1053_v40, 4 }
 0x1d6   :  { %909 = vst.msk [vmem:[%s1902_s7 + $0x48] sm:$0xff] %vm899_vm3, %v892_v43  ;;  %v1816_v48 = vadd.f32 %v1783_v41, %v769_v39  ;;  %v748_v49 = vadd.f32 %v747_v45, %v633_v19  ;;  %1399 = vpow2.f32 %v841_v44 }
 0x1d7   :  { %v1031_v52 = vrot.slane %v1030_v46, 2  ;;  %v885_v53 = vsel %vm805_vm8, %v789_v6, %v1305_v47  ;;  %v1083_v57 = vadd.f32 %v1082_v50, %v1053_v40  ;;  %v642_v40 = vpop.f32.mrf.mxu0 }
 0x1d8   :  { %v830_v54 = vmin.f32 %v1816_v48, 0.0  ;;  %v1820_v55 = vadd.f32 %v1783_v41, %v748_v49  ;;  %902 = vst.msk [vmem:[%s1902_s7 + $0x10] sm:$0xff] %vm899_vm3, %v885_v53  ;;  %vm814_vm11 = vcmp.gt.f32.partialorder %v1816_v48, 0.0 }
 0x1d9   :  { %v1032_v56 = vadd.f32 %v1031_v52, %v1030_v46  ;;  %v1084_v0 = vrot.slane %v1083_v57, 2 }
 0x1da   :  { %v1398_v58 = vpop.eup %1397  ;;  %v857_v59 = vmul.f32 1.442695, %v830_v54  ;;  %v823_v60 = vmin.f32 %v1820_v55, 0.0  ;;  %vm807_vm12 = vcmp.gt.f32.partialorder %v1820_v55, 0.0 }
 0x1db   :  { %v1313_v61 = vadd.f32 -1.0, %v1398_v58  ;;  %v771_v62 = vpop.f32.mrf.mxu3  ;;  %v1033_v63 = vrot.slane %v1032_v56, 1  ;;  %v1085_v8 = vadd.f32 %v1084_v0, %v1083_v57 }
 0x1dc   :  { %1401 = vpow2.f32 %v857_v59  ;;  %v843_v1 = vmul.f32 1.442695, %v823_v60  ;;  %v772_v2 = vadd.f32 %v771_v62, %v657_v37  ;;  %v1400_v3 = vpop.eup %1399  ;;  %v666_v53 = vpop.f32.mrf.mxu2 }
 0x1dd   :  { %v893_v4 = vsel %vm813_vm9, %v797_v20, %v1313_v61  ;;  %v750_v6 = vpop.f32.mrf.mxu1  ;;  %v1034_v7 = vadd.f32 %v1033_v63, %v1032_v56  ;;  %v1306_v9 = vadd.f32 -1.0, %v1400_v3  ;;  %v1086_v12 = vrot.slane %v1085_v8, 1 }
 0x1de   :  { %910 = vst.msk [vmem:[%s1902_s7 + $0x50] sm:$0xff] %vm899_vm3, %v893_v4  ;;  %1403 = vpow2.f32 %v843_v1  ;;  %v799_v10 = vadd.f32 %v1783_v41, %v772_v2  ;;  %v751_v11 = vadd.f32 %v750_v6, %v636_v51 }
 0x1df   :  { %1088 = vst.msk [vmem:[#allocation2] sm:$0xff] %vm899_vm3, %v1034_v7  ;;  %v886_v13 = vsel %vm806_vm10, %v1806_v28, %v1306_v9  ;;  %v1087_v17 = vadd.f32 %v1086_v12, %v1085_v8 }
 0x1e0   :  { %v831_v14 = vmin.f32 %v799_v10, 0.0  ;;  %v792_v15 = vadd.f32 %v1783_v41, %v751_v11  ;;  %1102 = dma.vmem_to_hbm [thread:$0]  %s1098_s14, 128, %s1100_s4, [#allocation3]   ;;  %903 = vst.msk [vmem:[%s1902_s7 + $0x18] sm:$0xff] %vm899_vm3, %v886_v13  ;;  %vm815_vm13 = vcmp.gt.f32.partialorder %v799_v10, 0.0 }
 0x1e1   :  { %1089 = vst.msk [vmem:[#allocation4] sm:$0xff] %vm899_vm3, %v1087_v17 }
 0x1e2   :  { %v1402_v18 = vpop.eup %1401  ;;  %v859_v19 = vmul.f32 1.442695, %v831_v14  ;;  %v824_v20 = vmin.f32 %v792_v15, 0.0  ;;  %1113 = dma.vmem_to_hbm [thread:$0]  %s1109_s18, 128, %s1111_s21, [#allocation5]   ;;  %vm808_vm14 = vcmp.gt.f32.partialorder %v792_v15, 0.0 }
 0x1e3   :  { %v1314_v21 = vadd.f32 -1.0, %v1402_v18  ;;  %v774_v22 = vpop.f32.mrf.mxu3 }
 0x1e4   :  { %v1404_v23 = vpop.eup %1403  ;;  %1405 = vpow2.f32 %v859_v19  ;;  %v845_v24 = vmul.f32 1.442695, %v824_v20  ;;  %v775_v25 = vadd.f32 %v774_v22, %v660_v5 }
 0x1e5   :  { %v894_v26 = vsel %vm814_vm11, %v1816_v48, %v1314_v21  ;;  %v1307_v27 = vadd.f32 -1.0, %v1404_v23  ;;  %v753_v28 = vpop.f32.mrf.mxu1 }
 0x1e6   :  { %911 = vst.msk [vmem:[%s1902_s7 + $0x58] sm:$0xff] %vm899_vm3, %v894_v26  ;;  %1407 = vpow2.f32 %v845_v24  ;;  %v800_v29 = vadd.f32 %v1783_v41, %v775_v25  ;;  %v754_v30 = vadd.f32 %v753_v28, %v639_v16 }
 0x1e7   :  { %v887_v31 = vsel %vm807_vm12, %v1820_v55, %v1307_v27 }
 0x1e8   :  { %904 = vst.msk [vmem:[%s1902_s7 + $0x20] sm:$0xff] %vm899_vm3, %v887_v31  ;;  %v832_v33 = vmin.f32 %v800_v29, 0.0  ;;  %v793_v34 = vadd.f32 %v1783_v41, %v754_v30  ;;  %vm816_vm15 = vcmp.gt.f32.partialorder %v800_v29, 0.0 }
 0x1ea   :  { %v1406_v35 = vpop.eup %1405  ;;  %v861_v36 = vmul.f32 1.442695, %v832_v33  ;;  %v825_v37 = vmin.f32 %v793_v34, 0.0  ;;  %vm809_vm0 = vcmp.gt.f32.partialorder %v793_v34, 0.0 }
 0x1eb   :  { %v1315_v38 = vadd.f32 -1.0, %v1406_v35  ;;  %v777_v39 = vpop.f32.mrf.mxu3 }
 0x1ec   :  { %v1408_v42 = vpop.eup %1407  ;;  %1409 = vpow2.f32 %v861_v36  ;;  %v847_v43 = vmul.f32 1.442695, %v825_v37  ;;  %v778_v44 = vadd.f32 %v777_v39, %v663_v32 }
 0x1ed   :  { %v895_v45 = vsel %vm815_vm13, %v799_v10, %v1315_v38  ;;  %v1308_v46 = vadd.f32 -1.0, %v1408_v42  ;;  %v756_v47 = vpop.f32.mrf.mxu1 }
 0x1ee   :  { %912 = vst.msk [vmem:[%s1902_s7 + $0x60] sm:$0xff] %vm899_vm3, %v895_v45  ;;  %1411 = vpow2.f32 %v847_v43  ;;  %v801_v48 = vadd.f32 %v1783_v41, %v778_v44  ;;  %v757_v49 = vadd.f32 %v756_v47, %v642_v40 }
 0x1ef   :  { %v888_v50 = vsel %vm808_vm14, %v792_v15, %v1308_v46 }
 0x1f0   :  { %905 = vst.msk [vmem:[%s1902_s7 + $0x28] sm:$0xff] %vm899_vm3, %v888_v50  ;;  %v833_v51 = vmin.f32 %v801_v48, 0.0  ;;  %v794_v52 = vadd.f32 %v1783_v41, %v757_v49  ;;  %vm817_vm1 = vcmp.gt.f32.partialorder %v801_v48, 0.0 }
 0x1f2   :  { %v1410_v54 = vpop.eup %1409  ;;  %v863_v55 = vmul.f32 1.442695, %v833_v51  ;;  %v826_v56 = vmin.f32 %v794_v52, 0.0  ;;  %vm810_vm2 = vcmp.gt.f32.partialorder %v794_v52, 0.0 }
 0x1f3   :  { %v1316_v57 = vadd.f32 -1.0, %v1410_v54  ;;  %v780_v58 = vpop.f32.mrf.mxu3 }
 0x1f4   :  { %v1412_v59 = vpop.eup %1411  ;;  %1413 = vpow2.f32 %v863_v55  ;;  %v849_v60 = vmul.f32 1.442695, %v826_v56  ;;  %v781_v61 = vadd.f32 %v780_v58, %v666_v53 }
 0x1f5   :  { %v896_v62 = vsel %vm816_vm15, %v800_v29, %v1316_v57  ;;  %v1309_v63 = vadd.f32 -1.0, %v1412_v59 }
 0x1f6   :  { %913 = vst.msk [vmem:[%s1902_s7 + $0x68] sm:$0xff] %vm899_vm3, %v896_v62  ;;  %1415 = vpow2.f32 %v849_v60  ;;  %v802_v0 = vadd.f32 %v1783_v41, %v781_v61 }
 0x1f7   :  { %v889_v1 = vsel %vm809_vm0, %v793_v34, %v1309_v63 }
 0x1f8   :  { %906 = vst.msk [vmem:[%s1902_s7 + $0x30] sm:$0xff] %vm899_vm3, %v889_v1  ;;  %v834_v2 = vmin.f32 %v802_v0, 0.0  ;;  %vm818_vm4 = vcmp.gt.f32.partialorder %v802_v0, 0.0 }
 0x1fa   :  { %v1414_v3 = vpop.eup %1413  ;;  %v865_v4 = vmul.f32 1.442695, %v834_v2 }
 0x1fb   :  { %v1317_v5 = vadd.f32 -1.0, %v1414_v3 }
 0x1fc   :  { %v1416_v6 = vpop.eup %1415  ;;  %1417 = vpow2.f32 %v865_v4 }
 0x1fd   :  { %v897_v7 = vsel %vm817_vm1, %v801_v48, %v1317_v5  ;;  %v1310_v8 = vadd.f32 -1.0, %v1416_v6 }
 0x1fe   :  { %914 = vst.msk [vmem:[%s1902_s7 + $0x70] sm:$0xff] %vm899_vm3, %v897_v7 }
 0x1ff   :  { %v890_v41 = vsel %vm810_vm2, %v794_v52, %v1310_v8 }
 0x200   :  { %907 = vst.msk [vmem:[%s1902_s7 + $0x38] sm:$0xff] %vm899_vm3, %v890_v41 }
 0x202   :  { %v1418_v9 = vpop.eup %1417 }
 0x203   :  { %v1318_v10 = vadd.f32 -1.0, %v1418_v9 }
 0x205   :  { %v898_v11 = vsel %vm818_vm4, %v802_v0, %v1318_v10 }
 0x206   :  { %915 = vst.msk [vmem:[%s1902_s7 + $0x78] sm:$0xff] %vm899_vm3, %v898_v11 }
 0x207   :  { %1467 = dma.done.wait [#allocation3], 128  }
 0x208   :  { %1468 = vsyncadd [#allocation3], 4294967168 }
 0x209   :  { %1469 = dma.done.wait [#allocation5], 128  }
 0x20a   :  { %1470 = vsyncadd [#allocation5], 4294967168 }
 0x20b   :  { %1124 = vsyncpa [#allocation3], 1 }
 0x20c   :  { %1125 = vsyncpa [#allocation5], 1 }

</bundles_post_ra>
